<compile_context>
chip_gen: v5e
topology: v5e:2x2
jax: 0.10.0
libtpu: 0.0.40
codegen_flags: <defaults>
</compile_context>

<pallas_src>
import jax
import jax.numpy as jnp
from jax.experimental import pallas as pl
from jax.experimental.pallas import tpu as pltpu


def _film_relu(h, a_w, a_b, s_w, s_b, t_w, t_b):
    """Meta block (Linear -> ReLU -> split Linear), FiLM modulation, ReLU."""
    m = jnp.dot(h, a_w, preferred_element_type=jnp.float32) + a_b
    m = jnp.maximum(m, 0.0)
    scale = jnp.dot(m, s_w, preferred_element_type=jnp.float32) + s_b
    shift = jnp.dot(m, t_w, preferred_element_type=jnp.float32) + t_b
    h = h * (1.0 + jnp.tanh(scale)) + shift
    return jnp.maximum(h, 0.0)


def _meta_forward_kernel(x_ref,
                         w0_ref, b0_ref, w1_ref, b1_ref, w2_ref, b2_ref,
                         m0a_w_ref, m0a_b_ref,
                         m0s_w_ref, m0s_b_ref, m0t_w_ref, m0t_b_ref,
                         m1a_w_ref, m1a_b_ref,
                         m1s_w_ref, m1s_b_ref, m1t_w_ref, m1t_b_ref,
                         o_ref):
    x = x_ref[...]                                                  # (B, Din)

    # base layer 0 -> meta block 0 (FiLM) -> ReLU
    h = jnp.dot(x, w0_ref[...], preferred_element_type=jnp.float32) + b0_ref[...]
    h = _film_relu(h, m0a_w_ref[...], m0a_b_ref[...],
                   m0s_w_ref[...], m0s_b_ref[...],
                   m0t_w_ref[...], m0t_b_ref[...])

    # base layer 1 -> meta block 1 (FiLM) -> ReLU
    h = jnp.dot(h, w1_ref[...], preferred_element_type=jnp.float32) + b1_ref[...]
    h = _film_relu(h, m1a_w_ref[...], m1a_b_ref[...],
                   m1s_w_ref[...], m1s_b_ref[...],
                   m1t_w_ref[...], m1t_b_ref[...])

    # base layer 2 (output head)
    y = jnp.dot(h, w2_ref[...], preferred_element_type=jnp.float32) + b2_ref[...]
    o_ref[...] = y.astype(o_ref.dtype)


@jax.jit
def meta_learning_forward(x, w0, b0, w1, b1, w2, b2,
                          m0a_w, m0a_b, m0s_w, m0s_b, m0t_w, m0t_b,
                          m1a_w, m1a_b, m1s_w, m1s_b, m1t_w, m1t_b):
    """Pallas forward of MetaLearningModule.  x: (B, Din) -> (B, Dout)."""
    B, Din = x.shape
    H = w0.shape[1]
    Dout = w2.shape[1]
    Mh = m0a_w.shape[1]

    # Batch tile: full batch at small sizes (single grid step = no per-step
    # pipeline overhead); 256-row tiles for large batches (megacore-parallel,
    # weights stay resident across tiles).
    bb = B if B <= 256 else 256
    grid = (pl.cdiv(B, bb),)

    shared = lambda i: (0, 0)  # weights/biases resident across batch tiles

    return pl.pallas_call(
        _meta_forward_kernel,
        out_shape=jax.ShapeDtypeStruct((B, Dout), jnp.float32),
        grid_spec=pltpu.PrefetchScalarGridSpec(
            num_scalar_prefetch=0,
            grid=grid,
            in_specs=[
                pl.BlockSpec((bb, Din), lambda i: (i, 0)),   # x (batch tile)
                pl.BlockSpec((Din, H), shared),              # W0
                pl.BlockSpec((1, H), shared),                # b0
                pl.BlockSpec((H, H), shared),                # W1
                pl.BlockSpec((1, H), shared),                # b1
                pl.BlockSpec((H, Dout), shared),             # W2
                pl.BlockSpec((1, Dout), shared),             # b2
                pl.BlockSpec((H, Mh), shared),               # meta0 Wa
                pl.BlockSpec((1, Mh), shared),               # meta0 ba
                pl.BlockSpec((Mh, H), shared),               # meta0 Wb (scale)
                pl.BlockSpec((1, H), shared),                # meta0 bb (scale)
                pl.BlockSpec((Mh, H), shared),               # meta0 Wb (shift)
                pl.BlockSpec((1, H), shared),                # meta0 bb (shift)
                pl.BlockSpec((H, Mh), shared),               # meta1 Wa
                pl.BlockSpec((1, Mh), shared),               # meta1 ba
                pl.BlockSpec((Mh, H), shared),               # meta1 Wb (scale)
                pl.BlockSpec((1, H), shared),                # meta1 bb (scale)
                pl.BlockSpec((Mh, H), shared),               # meta1 Wb (shift)
                pl.BlockSpec((1, H), shared),                # meta1 bb (shift)
            ],
            out_specs=pl.BlockSpec((bb, Dout), lambda i: (i, 0)),
        ),
        compiler_params=pltpu.CompilerParams(
            dimension_semantics=("parallel",),
        ),
    )(x, w0, b0, w1, b1, w2, b2,
      m0a_w, m0a_b, m0s_w, m0s_b, m0t_w, m0t_b,
      m1a_w, m1a_b, m1s_w, m1s_b, m1t_w, m1t_b)


def _xavier_normal(key, fan_in, fan_out, dtype=jnp.float32):
    std = jnp.sqrt(2.0 / (fan_in + fan_out)).astype(dtype)
    return jax.random.normal(key, (fan_in, fan_out), dtype=dtype) * std


class MetaLearningModulePallas:
    """JAX/Pallas re-implementation of MetaLearningModule's forward pass."""

    def __init__(self, input_dim, hidden_dim, output_dim,
                 meta_hidden_dim=64, num_meta_layers=3, key=None):
        if num_meta_layers < 2:
            # Forward only ever consumes the first two meta blocks (2 ReLUs).
            raise NotImplementedError("kernel assumes >= 2 meta layers")
        self.input_dim = input_dim
        self.hidden_dim = hidden_dim
        self.output_dim = output_dim
        self.meta_hidden_dim = meta_hidden_dim
        self.num_meta_layers = num_meta_layers

        if key is None:
            key = jax.random.PRNGKey(0)
        keys = jax.random.split(key, 3 + 2 * num_meta_layers)

        f32 = jnp.float32
        H = hidden_dim
        # Base network weights in math layout (in, out); biases zero (spec).
        self.params = {
            "w0": _xavier_normal(keys[0], input_dim, hidden_dim),
            "b0": jnp.zeros((1, hidden_dim), f32),
            "w1": _xavier_normal(keys[1], hidden_dim, hidden_dim),
            "b1": jnp.zeros((1, hidden_dim), f32),
            "w2": _xavier_normal(keys[2], hidden_dim, output_dim),
            "b2": jnp.zeros((1, output_dim), f32),
        }
        # Meta network (only the first two blocks participate in forward).
        # The second Linear (mh -> 2h) is initialized as a single Xavier matrix
        # (fan_out = 2h, matching PyTorch) and then pre-split into the scale
        # half and the shift half so the kernel avoids lane-crossing chunks.
        self.meta_params = []
        for li in range(num_meta_layers):
            ka, kb = keys[3 + 2 * li], keys[4 + 2 * li]
            b_w_full = _xavier_normal(kb, meta_hidden_dim, 2 * hidden_dim)
            self.meta_params.append({
                "a_w": _xavier_normal(ka, hidden_dim, meta_hidden_dim),
                "a_b": jnp.zeros((1, meta_hidden_dim), f32),
                "s_w": b_w_full[:, :H],            # scale half
                "s_b": jnp.zeros((1, H), f32),
                "t_w": b_w_full[:, H:],            # shift half
                "t_b": jnp.zeros((1, H), f32),
            })

    def forward(self, x):
        p, m0, m1 = self.params, self.meta_params[0], self.meta_params[1]
        return meta_learning_forward(
            x, p["w0"], p["b0"], p["w1"], p["b1"], p["w2"], p["b2"],
            m0["a_w"], m0["a_b"], m0["s_w"], m0["s_b"], m0["t_w"], m0["t_b"],
            m1["a_w"], m1["a_b"], m1["s_w"], m1["s_b"], m1["t_w"], m1["t_b"])

    __call__ = forward

    # TODO(synk): adapt(support_x, support_y, ...) — inner SGD/autograd loop,
    # grad clipping and noise re-init are host-side training logic, not a
    # Pallas forward kernel.

    def reference_forward(self, x):
        """Pure-JAX reference (mirrors the PyTorch forward)."""
        def film(h, mp):
            m = jnp.maximum(h @ mp["a_w"] + mp["a_b"], 0.0)
            scale = m @ mp["s_w"] + mp["s_b"]
            shift = m @ mp["t_w"] + mp["t_b"]
            return h * (1.0 + jnp.tanh(scale)) + shift

        p = self.params
        h = x @ p["w0"] + p["b0"]
        h = jnp.maximum(film(h, self.meta_params[0]), 0.0)
        h = h @ p["w1"] + p["b1"]
        h = jnp.maximum(film(h, self.meta_params[1]), 0.0)
        return h @ p["w2"] + p["b2"]


if __name__ == "__main__":
    key = jax.random.PRNGKey(0)
    k_model, k_x, k_bias = jax.random.split(key, 3)

    B, Din, H, Dout, Mh = 8, 32, 64, 16, 64
    module = MetaLearningModulePallas(Din, H, Dout, meta_hidden_dim=Mh,
                                      num_meta_layers=3, key=k_model)

    # Give all biases small nonzero values (as if post-adaptation) so the
    # correctness check also exercises every bias-add path in the kernel.
    bkeys = jax.random.split(k_bias, 3 + module.num_meta_layers * 3)
    module.params["b0"] = 0.01 * jax.random.normal(bkeys[0], (1, H))
    module.params["b1"] = 0.01 * jax.random.normal(bkeys[1], (1, H))
    module.params["b2"] = 0.01 * jax.random.normal(bkeys[2], (1, Dout))
    for li, mp in enumerate(module.meta_params):
        mp["a_b"] = 0.01 * jax.random.normal(bkeys[3 + 3 * li], (1, Mh))
        mp["s_b"] = 0.01 * jax.random.normal(bkeys[4 + 3 * li], (1, H))
        mp["t_b"] = 0.01 * jax.random.normal(bkeys[5 + 3 * li], (1, H))

    x = jax.random.normal(k_x, (B, Din), dtype=jnp.float32)

    out = module(x)
    out = jax.block_until_ready(out)

    ref = module.reference_forward(x)
    assert out.shape == (B, Dout), out.shape
    assert jnp.allclose(out, ref, atol=1e-4, rtol=1e-4), (
        float(jnp.max(jnp.abs(out - ref))))

    print("KERNEL_OK")
</pallas_src>

<mosaic_0001>
module attributes {stable_mosaic.version = 11 : i64} {
  func.func @_meta_forward_kernel(%arg0: i32, %arg1: memref<8x32xf32, #tpu.memory_space<vmem>>, %arg2: memref<32x64xf32, #tpu.memory_space<vmem>>, %arg3: memref<1x64xf32, #tpu.memory_space<vmem>>, %arg4: memref<64x64xf32, #tpu.memory_space<vmem>>, %arg5: memref<1x64xf32, #tpu.memory_space<vmem>>, %arg6: memref<64x16xf32, #tpu.memory_space<vmem>>, %arg7: memref<1x16xf32, #tpu.memory_space<vmem>>, %arg8: memref<64x64xf32, #tpu.memory_space<vmem>>, %arg9: memref<1x64xf32, #tpu.memory_space<vmem>>, %arg10: memref<64x64xf32, #tpu.memory_space<vmem>>, %arg11: memref<1x64xf32, #tpu.memory_space<vmem>>, %arg12: memref<64x64xf32, #tpu.memory_space<vmem>>, %arg13: memref<1x64xf32, #tpu.memory_space<vmem>>, %arg14: memref<64x64xf32, #tpu.memory_space<vmem>>, %arg15: memref<1x64xf32, #tpu.memory_space<vmem>>, %arg16: memref<64x64xf32, #tpu.memory_space<vmem>>, %arg17: memref<1x64xf32, #tpu.memory_space<vmem>>, %arg18: memref<64x64xf32, #tpu.memory_space<vmem>>, %arg19: memref<1x64xf32, #tpu.memory_space<vmem>>, %arg20: memref<8x16xf32, #tpu.memory_space<vmem>>) attributes {dimension_semantics = [#tpu.dimension_semantics<parallel>], iteration_bounds = array<i64: 1>, scalar_prefetch = 0 : i64, scratch_operands = 0 : i64, tpu.core_type = #tpu.core_type<tc>, window_params = [{transform_indices = @transform_0, window_bounds = array<i64: 8, 32>}, {pipeline_mode = #tpu.pipeline_mode<synchronous>, transform_indices = @transform_1, window_bounds = array<i64: 32, 64>}, {pipeline_mode = #tpu.pipeline_mode<synchronous>, transform_indices = @transform_2, window_bounds = array<i64: 1, 64>}, {pipeline_mode = #tpu.pipeline_mode<synchronous>, transform_indices = @transform_3, window_bounds = array<i64: 64, 64>}, {pipeline_mode = #tpu.pipeline_mode<synchronous>, transform_indices = @transform_4, window_bounds = array<i64: 1, 64>}, {pipeline_mode = #tpu.pipeline_mode<synchronous>, transform_indices = @transform_5, window_bounds = array<i64: 64, 16>}, {pipeline_mode = #tpu.pipeline_mode<synchronous>, transform_indices = @transform_6, window_bounds = array<i64: 1, 16>}, {pipeline_mode = #tpu.pipeline_mode<synchronous>, transform_indices = @transform_7, window_bounds = array<i64: 64, 64>}, {pipeline_mode = #tpu.pipeline_mode<synchronous>, transform_indices = @transform_8, window_bounds = array<i64: 1, 64>}, {pipeline_mode = #tpu.pipeline_mode<synchronous>, transform_indices = @transform_9, window_bounds = array<i64: 64, 64>}, {pipeline_mode = #tpu.pipeline_mode<synchronous>, transform_indices = @transform_10, window_bounds = array<i64: 1, 64>}, {pipeline_mode = #tpu.pipeline_mode<synchronous>, transform_indices = @transform_11, window_bounds = array<i64: 64, 64>}, {pipeline_mode = #tpu.pipeline_mode<synchronous>, transform_indices = @transform_12, window_bounds = array<i64: 1, 64>}, {pipeline_mode = #tpu.pipeline_mode<synchronous>, transform_indices = @transform_13, window_bounds = array<i64: 64, 64>}, {pipeline_mode = #tpu.pipeline_mode<synchronous>, transform_indices = @transform_14, window_bounds = array<i64: 1, 64>}, {pipeline_mode = #tpu.pipeline_mode<synchronous>, transform_indices = @transform_15, window_bounds = array<i64: 64, 64>}, {pipeline_mode = #tpu.pipeline_mode<synchronous>, transform_indices = @transform_16, window_bounds = array<i64: 1, 64>}, {pipeline_mode = #tpu.pipeline_mode<synchronous>, transform_indices = @transform_17, window_bounds = array<i64: 64, 64>}, {pipeline_mode = #tpu.pipeline_mode<synchronous>, transform_indices = @transform_18, window_bounds = array<i64: 1, 64>}, {transform_indices = @transform_19, window_bounds = array<i64: 8, 16>}]} {
    %c0 = arith.constant 0 : index
    %c0_0 = arith.constant 0 : index
    %0 = vector.load %arg1[%c0, %c0_0] : memref<8x32xf32, #tpu.memory_space<vmem>>, vector<8x32xf32>
    %c0_1 = arith.constant 0 : index
    %c0_2 = arith.constant 0 : index
    %1 = vector.load %arg2[%c0_1, %c0_2] : memref<32x64xf32, #tpu.memory_space<vmem>>, vector<32x64xf32>
    %cst = arith.constant dense<0.000000e+00> : vector<8x64xf32>
    %2 = tpu.matmul %0, %1, %cst {dimension_numbers = #tpu.dot_dimension_numbers<[1], [0], [0], [1], [0, 0, 1, 1], [], []>} : vector<8x32xf32>, vector<32x64xf32>, vector<8x64xf32> -> vector<8x64xf32>
    %c0_3 = arith.constant 0 : index
    %c0_4 = arith.constant 0 : index
    %3 = vector.load %arg3[%c0_3, %c0_4] : memref<1x64xf32, #tpu.memory_space<vmem>>, vector<1x64xf32>
    %4 = vector.broadcast %3 : vector<1x64xf32> to vector<8x64xf32>
    %5 = arith.addf %2, %4 : vector<8x64xf32>
    %c0_5 = arith.constant 0 : index
    %c0_6 = arith.constant 0 : index
    %6 = vector.load %arg8[%c0_5, %c0_6] : memref<64x64xf32, #tpu.memory_space<vmem>>, vector<64x64xf32>
    %c0_7 = arith.constant 0 : index
    %c0_8 = arith.constant 0 : index
    %7 = vector.load %arg9[%c0_7, %c0_8] : memref<1x64xf32, #tpu.memory_space<vmem>>, vector<1x64xf32>
    %c0_9 = arith.constant 0 : index
    %c0_10 = arith.constant 0 : index
    %8 = vector.load %arg10[%c0_9, %c0_10] : memref<64x64xf32, #tpu.memory_space<vmem>>, vector<64x64xf32>
    %c0_11 = arith.constant 0 : index
    %c0_12 = arith.constant 0 : index
    %9 = vector.load %arg11[%c0_11, %c0_12] : memref<1x64xf32, #tpu.memory_space<vmem>>, vector<1x64xf32>
    %c0_13 = arith.constant 0 : index
    %c0_14 = arith.constant 0 : index
    %10 = vector.load %arg12[%c0_13, %c0_14] : memref<64x64xf32, #tpu.memory_space<vmem>>, vector<64x64xf32>
    %c0_15 = arith.constant 0 : index
    %c0_16 = arith.constant 0 : index
    %11 = vector.load %arg13[%c0_15, %c0_16] : memref<1x64xf32, #tpu.memory_space<vmem>>, vector<1x64xf32>
    %cst_17 = arith.constant dense<0.000000e+00> : vector<8x64xf32>
    %12 = tpu.matmul %5, %6, %cst_17 {dimension_numbers = #tpu.dot_dimension_numbers<[1], [0], [0], [1], [0, 0, 1, 1], [], []>} : vector<8x64xf32>, vector<64x64xf32>, vector<8x64xf32> -> vector<8x64xf32>
    %13 = vector.broadcast %7 : vector<1x64xf32> to vector<8x64xf32>
    %14 = arith.addf %12, %13 : vector<8x64xf32>
    %cst_18 = arith.constant 0.000000e+00 : f32
    %15 = vector.broadcast %cst_18 : f32 to vector<8x64xf32>
    %16 = arith.maximumf %14, %15 : vector<8x64xf32>
    %cst_19 = arith.constant dense<0.000000e+00> : vector<8x64xf32>
    %17 = tpu.matmul %16, %8, %cst_19 {dimension_numbers = #tpu.dot_dimension_numbers<[1], [0], [0], [1], [0, 0, 1, 1], [], []>} : vector<8x64xf32>, vector<64x64xf32>, vector<8x64xf32> -> vector<8x64xf32>
    %18 = vector.broadcast %9 : vector<1x64xf32> to vector<8x64xf32>
    %19 = arith.addf %17, %18 : vector<8x64xf32>
    %cst_20 = arith.constant dense<0.000000e+00> : vector<8x64xf32>
    %20 = tpu.matmul %16, %10, %cst_20 {dimension_numbers = #tpu.dot_dimension_numbers<[1], [0], [0], [1], [0, 0, 1, 1], [], []>} : vector<8x64xf32>, vector<64x64xf32>, vector<8x64xf32> -> vector<8x64xf32>
    %21 = vector.broadcast %11 : vector<1x64xf32> to vector<8x64xf32>
    %22 = arith.addf %20, %21 : vector<8x64xf32>
    %23 = math.tanh %19 : vector<8x64xf32>
    %cst_21 = arith.constant 1.000000e+00 : f32
    %24 = vector.broadcast %cst_21 : f32 to vector<8x64xf32>
    %25 = arith.addf %24, %23 : vector<8x64xf32>
    %26 = arith.mulf %5, %25 : vector<8x64xf32>
    %27 = arith.addf %26, %22 : vector<8x64xf32>
    %cst_22 = arith.constant 0.000000e+00 : f32
    %28 = vector.broadcast %cst_22 : f32 to vector<8x64xf32>
    %29 = arith.maximumf %27, %28 : vector<8x64xf32>
    %c0_23 = arith.constant 0 : index
    %c0_24 = arith.constant 0 : index
    %30 = vector.load %arg4[%c0_23, %c0_24] : memref<64x64xf32, #tpu.memory_space<vmem>>, vector<64x64xf32>
    %cst_25 = arith.constant dense<0.000000e+00> : vector<8x64xf32>
    %31 = tpu.matmul %29, %30, %cst_25 {dimension_numbers = #tpu.dot_dimension_numbers<[1], [0], [0], [1], [0, 0, 1, 1], [], []>} : vector<8x64xf32>, vector<64x64xf32>, vector<8x64xf32> -> vector<8x64xf32>
    %c0_26 = arith.constant 0 : index
    %c0_27 = arith.constant 0 : index
    %32 = vector.load %arg5[%c0_26, %c0_27] : memref<1x64xf32, #tpu.memory_space<vmem>>, vector<1x64xf32>
    %33 = vector.broadcast %32 : vector<1x64xf32> to vector<8x64xf32>
    %34 = arith.addf %31, %33 : vector<8x64xf32>
    %c0_28 = arith.constant 0 : index
    %c0_29 = arith.constant 0 : index
    %35 = vector.load %arg14[%c0_28, %c0_29] : memref<64x64xf32, #tpu.memory_space<vmem>>, vector<64x64xf32>
    %c0_30 = arith.constant 0 : index
    %c0_31 = arith.constant 0 : index
    %36 = vector.load %arg15[%c0_30, %c0_31] : memref<1x64xf32, #tpu.memory_space<vmem>>, vector<1x64xf32>
    %c0_32 = arith.constant 0 : index
    %c0_33 = arith.constant 0 : index
    %37 = vector.load %arg16[%c0_32, %c0_33] : memref<64x64xf32, #tpu.memory_space<vmem>>, vector<64x64xf32>
    %c0_34 = arith.constant 0 : index
    %c0_35 = arith.constant 0 : index
    %38 = vector.load %arg17[%c0_34, %c0_35] : memref<1x64xf32, #tpu.memory_space<vmem>>, vector<1x64xf32>
    %c0_36 = arith.constant 0 : index
    %c0_37 = arith.constant 0 : index
    %39 = vector.load %arg18[%c0_36, %c0_37] : memref<64x64xf32, #tpu.memory_space<vmem>>, vector<64x64xf32>
    %c0_38 = arith.constant 0 : index
    %c0_39 = arith.constant 0 : index
    %40 = vector.load %arg19[%c0_38, %c0_39] : memref<1x64xf32, #tpu.memory_space<vmem>>, vector<1x64xf32>
    %cst_40 = arith.constant dense<0.000000e+00> : vector<8x64xf32>
    %41 = tpu.matmul %34, %35, %cst_40 {dimension_numbers = #tpu.dot_dimension_numbers<[1], [0], [0], [1], [0, 0, 1, 1], [], []>} : vector<8x64xf32>, vector<64x64xf32>, vector<8x64xf32> -> vector<8x64xf32>
    %42 = vector.broadcast %36 : vector<1x64xf32> to vector<8x64xf32>
    %43 = arith.addf %41, %42 : vector<8x64xf32>
    %cst_41 = arith.constant 0.000000e+00 : f32
    %44 = vector.broadcast %cst_41 : f32 to vector<8x64xf32>
    %45 = arith.maximumf %43, %44 : vector<8x64xf32>
    %cst_42 = arith.constant dense<0.000000e+00> : vector<8x64xf32>
    %46 = tpu.matmul %45, %37, %cst_42 {dimension_numbers = #tpu.dot_dimension_numbers<[1], [0], [0], [1], [0, 0, 1, 1], [], []>} : vector<8x64xf32>, vector<64x64xf32>, vector<8x64xf32> -> vector<8x64xf32>
    %47 = vector.broadcast %38 : vector<1x64xf32> to vector<8x64xf32>
    %48 = arith.addf %46, %47 : vector<8x64xf32>
    %cst_43 = arith.constant dense<0.000000e+00> : vector<8x64xf32>
    %49 = tpu.matmul %45, %39, %cst_43 {dimension_numbers = #tpu.dot_dimension_numbers<[1], [0], [0], [1], [0, 0, 1, 1], [], []>} : vector<8x64xf32>, vector<64x64xf32>, vector<8x64xf32> -> vector<8x64xf32>
    %50 = vector.broadcast %40 : vector<1x64xf32> to vector<8x64xf32>
    %51 = arith.addf %49, %50 : vector<8x64xf32>
    %52 = math.tanh %48 : vector<8x64xf32>
    %cst_44 = arith.constant 1.000000e+00 : f32
    %53 = vector.broadcast %cst_44 : f32 to vector<8x64xf32>
    %54 = arith.addf %53, %52 : vector<8x64xf32>
    %55 = arith.mulf %34, %54 : vector<8x64xf32>
    %56 = arith.addf %55, %51 : vector<8x64xf32>
    %cst_45 = arith.constant 0.000000e+00 : f32
    %57 = vector.broadcast %cst_45 : f32 to vector<8x64xf32>
    %58 = arith.maximumf %56, %57 : vector<8x64xf32>
    %c0_46 = arith.constant 0 : index
    %c0_47 = arith.constant 0 : index
    %59 = vector.load %arg6[%c0_46, %c0_47] : memref<64x16xf32, #tpu.memory_space<vmem>>, vector<64x16xf32>
    %cst_48 = arith.constant dense<0.000000e+00> : vector<8x16xf32>
    %60 = tpu.matmul %58, %59, %cst_48 {dimension_numbers = #tpu.dot_dimension_numbers<[1], [0], [0], [1], [0, 0, 1, 1], [], []>} : vector<8x64xf32>, vector<64x16xf32>, vector<8x16xf32> -> vector<8x16xf32>
    %c0_49 = arith.constant 0 : index
    %c0_50 = arith.constant 0 : index
    %61 = vector.load %arg7[%c0_49, %c0_50] : memref<1x16xf32, #tpu.memory_space<vmem>>, vector<1x16xf32>
    %62 = vector.broadcast %61 : vector<1x16xf32> to vector<8x16xf32>
    %63 = arith.addf %60, %62 : vector<8x16xf32>
    %c0_51 = arith.constant 0 : index
    %c0_52 = arith.constant 0 : index
    %64 = vector.load %arg20[%c0_51, %c0_52] : memref<8x16xf32, #tpu.memory_space<vmem>>, vector<8x16xf32>
    tpu.vector_store %arg20[%c0_51, %c0_52], %63 {strides = array<i32>} : memref<8x16xf32, #tpu.memory_space<vmem>>, vector<8x16xf32>,
    return
  }
  func.func @transform_0(%arg0: i32) -> (i32, i32) {
    %c0_i32 = arith.constant 0 : i32
    %c0_i32_0 = arith.constant 0 : i32
    return %arg0, %c0_i32 : i32, i32
  }
  func.func @transform_1(%arg0: i32) -> (i32, i32) {
    %c0_i32 = arith.constant 0 : i32
    %c0_i32_0 = arith.constant 0 : i32
    %c0_i32_1 = arith.constant 0 : i32
    return %c0_i32, %c0_i32_0 : i32, i32
  }
  func.func @transform_2(%arg0: i32) -> (i32, i32) {
    %c0_i32 = arith.constant 0 : i32
    %c0_i32_0 = arith.constant 0 : i32
    %c0_i32_1 = arith.constant 0 : i32
    return %c0_i32, %c0_i32_0 : i32, i32
  }
  func.func @transform_3(%arg0: i32) -> (i32, i32) {
    %c0_i32 = arith.constant 0 : i32
    %c0_i32_0 = arith.constant 0 : i32
    %c0_i32_1 = arith.constant 0 : i32
    return %c0_i32, %c0_i32_0 : i32, i32
  }
  func.func @transform_4(%arg0: i32) -> (i32, i32) {
    %c0_i32 = arith.constant 0 : i32
    %c0_i32_0 = arith.constant 0 : i32
    %c0_i32_1 = arith.constant 0 : i32
    return %c0_i32, %c0_i32_0 : i32, i32
  }
  func.func @transform_5(%arg0: i32) -> (i32, i32) {
    %c0_i32 = arith.constant 0 : i32
    %c0_i32_0 = arith.constant 0 : i32
    %c0_i32_1 = arith.constant 0 : i32
    return %c0_i32, %c0_i32_0 : i32, i32
  }
  func.func @transform_6(%arg0: i32) -> (i32, i32) {
    %c0_i32 = arith.constant 0 : i32
    %c0_i32_0 = arith.constant 0 : i32
    %c0_i32_1 = arith.constant 0 : i32
    return %c0_i32, %c0_i32_0 : i32, i32
  }
  func.func @transform_7(%arg0: i32) -> (i32, i32) {
    %c0_i32 = arith.constant 0 : i32
    %c0_i32_0 = arith.constant 0 : i32
    %c0_i32_1 = arith.constant 0 : i32
    return %c0_i32, %c0_i32_0 : i32, i32
  }
  func.func @transform_8(%arg0: i32) -> (i32, i32) {
    %c0_i32 = arith.constant 0 : i32
    %c0_i32_0 = arith.constant 0 : i32
    %c0_i32_1 = arith.constant 0 : i32
    return %c0_i32, %c0_i32_0 : i32, i32
  }
  func.func @transform_9(%arg0: i32) -> (i32, i32) {
    %c0_i32 = arith.constant 0 : i32
    %c0_i32_0 = arith.constant 0 : i32
    %c0_i32_1 = arith.constant 0 : i32
    return %c0_i32, %c0_i32_0 : i32, i32
  }
  func.func @transform_10(%arg0: i32) -> (i32, i32) {
    %c0_i32 = arith.constant 0 : i32
    %c0_i32_0 = arith.constant 0 : i32
    %c0_i32_1 = arith.constant 0 : i32
    return %c0_i32, %c0_i32_0 : i32, i32
  }
  func.func @transform_11(%arg0: i32) -> (i32, i32) {
    %c0_i32 = arith.constant 0 : i32
    %c0_i32_0 = arith.constant 0 : i32
    %c0_i32_1 = arith.constant 0 : i32
    return %c0_i32, %c0_i32_0 : i32, i32
  }
  func.func @transform_12(%arg0: i32) -> (i32, i32) {
    %c0_i32 = arith.constant 0 : i32
    %c0_i32_0 = arith.constant 0 : i32
    %c0_i32_1 = arith.constant 0 : i32
    return %c0_i32, %c0_i32_0 : i32, i32
  }
  func.func @transform_13(%arg0: i32) -> (i32, i32) {
    %c0_i32 = arith.constant 0 : i32
    %c0_i32_0 = arith.constant 0 : i32
    %c0_i32_1 = arith.constant 0 : i32
    return %c0_i32, %c0_i32_0 : i32, i32
  }
  func.func @transform_14(%arg0: i32) -> (i32, i32) {
    %c0_i32 = arith.constant 0 : i32
    %c0_i32_0 = arith.constant 0 : i32
    %c0_i32_1 = arith.constant 0 : i32
    return %c0_i32, %c0_i32_0 : i32, i32
  }
  func.func @transform_15(%arg0: i32) -> (i32, i32) {
    %c0_i32 = arith.constant 0 : i32
    %c0_i32_0 = arith.constant 0 : i32
    %c0_i32_1 = arith.constant 0 : i32
    return %c0_i32, %c0_i32_0 : i32, i32
  }
  func.func @transform_16(%arg0: i32) -> (i32, i32) {
    %c0_i32 = arith.constant 0 : i32
    %c0_i32_0 = arith.constant 0 : i32
    %c0_i32_1 = arith.constant 0 : i32
    return %c0_i32, %c0_i32_0 : i32, i32
  }
  func.func @transform_17(%arg0: i32) -> (i32, i32) {
    %c0_i32 = arith.constant 0 : i32
    %c0_i32_0 = arith.constant 0 : i32
    %c0_i32_1 = arith.constant 0 : i32
    return %c0_i32, %c0_i32_0 : i32, i32
  }
  func.func @transform_18(%arg0: i32) -> (i32, i32) {
    %c0_i32 = arith.constant 0 : i32
    %c0_i32_0 = arith.constant 0 : i32
    %c0_i32_1 = arith.constant 0 : i32
    return %c0_i32, %c0_i32_0 : i32, i32
  }
  func.func @transform_19(%arg0: i32) -> (i32, i32) {
    %c0_i32 = arith.constant 0 : i32
    %c0_i32_0 = arith.constant 0 : i32
    return %arg0, %c0_i32 : i32, i32
  }
}

</mosaic_0001>

<bundles_post_ra>
// kernel: meta_learning_forward.1
= control target key start
LH: loop header
LB: loop body
LE: loop exit
PB: predicated region body
PF: predicated region fallthrough
CT: control target
= control target key end

     0   :  { %s989_s0 = inlined_call_operand.vmem [shape: f32[8,32], index: 0, kind: input, shape index: {}]   ;;  %s990_s1 = inlined_call_operand.hbm [shape: f32[32,64], index: 1, kind: input, shape index: {}]   ;;  %s991_s2 = inlined_call_operand.vmem [shape: f32[1,64], index: 2, kind: input, shape index: {}]   ;;  %s992_s3 = inlined_call_operand.vmem [shape: f32[64,64], index: 3, kind: input, shape index: {}]   ;;  %s993_s4 = inlined_call_operand.vmem [shape: f32[1,64], index: 4, kind: input, shape index: {}]   ;;  %s994_s5 = inlined_call_operand.vmem [shape: f32[64,16], index: 5, kind: input, shape index: {}]   ;;  %s995_s6 = inlined_call_operand.vmem [shape: f32[1,16], index: 6, kind: input, shape index: {}]   ;;  %s996_s7 = inlined_call_operand.hbm [shape: f32[64,64], index: 7, kind: input, shape index: {}]   ;;  %s997_s8 = inlined_call_operand.vmem [shape: f32[1,64], index: 8, kind: input, shape index: {}]   ;;  %s998_s9 = inlined_call_operand.hbm [shape: f32[64,64], index: 9, kind: input, shape index: {}]   ;;  %s999_s10 = inlined_call_operand.vmem [shape: f32[1,64], index: 10, kind: input, shape index: {}]   ;;  %s1000_s11 = inlined_call_operand.hbm [shape: f32[64,64], index: 11, kind: input, shape index: {}]   ;;  %s1001_s12 = inlined_call_operand.vmem [shape: f32[1,64], index: 12, kind: input, shape index: {}]   ;;  %s1002_s13 = inlined_call_operand.hbm [shape: f32[64,64], index: 13, kind: input, shape index: {}]   ;;  %s1003_s14 = inlined_call_operand.vmem [shape: f32[1,64], index: 14, kind: input, shape index: {}]   ;;  %s1004_s15 = inlined_call_operand.hbm [shape: f32[64,64], index: 15, kind: input, shape index: {}]   ;;  %s1005_s16 = inlined_call_operand.vmem [shape: f32[1,64], index: 16, kind: input, shape index: {}]   ;;  %s1006_s17 = inlined_call_operand.hbm [shape: f32[64,64], index: 17, kind: input, shape index: {}]   ;;  %s1007_s18 = inlined_call_operand.vmem [shape: f32[1,64], index: 18, kind: input, shape index: {}]   ;;  %s1008_s19 = inlined_call_operand.hbm [shape: f32[8,16], index: 19, kind: output, shape index: {}]  }
   0x1   :  { %1010 = sst [smem:[#allocation20_spill]] %s989_s0 }
   0x2   :  { %1011 = sst [smem:[#allocation21_spill]] %s990_s1 }
   0x3   :  { %1012 = sst [smem:[#allocation22_spill]] %s991_s2 }
   0x4   :  { %1013 = sst [smem:[#allocation23_spill]] %s992_s3 }
   0x5   :  { %24 = vsyncpa [#allocation3], 0 }
   0x6   :  { %25 = vsyncpa [#allocation6], 0 }
   0x7   :  { %26 = vsyncpa [#allocation9], 0 }
   0x8   :  { %27 = vsyncpa [#allocation12], 0 }
   0x9   :  { %28 = vsyncpa [#allocation4], 0  ;;  %s58_s20 = sshll.u32 %s996_s7, 4  ;;  %s748_s21 = smov [#allocation5]   ;;  %s59_s20 = int_to_ptr.hbm [resolvable:$true] %s58_s20 }
   0xa   :  { %s60_s1 = sshll.u32 %s748_s21, 4  ;;  %s88_s23 = sshll.u32 %s1000_s11, 4  ;;  %s61_s1 = int_to_ptr.vmem [resolvable:$true] %s60_s1  ;;  %s89_s23 = int_to_ptr.hbm [resolvable:$true] %s88_s23 }
   0xb   :  { %s749_s24 = smov 128   ;;  %s750_s25 = smov 8  }
   0xc   :  { %66 = dma.hbm_to_vmem [thread:$0]  %s59_s20, 1024, %s61_s1, [#allocation6], %s749_s24, %s749_s24, %s750_s25  }
   0xd   :  { %s751_s3 = smov [#allocation8]   ;;  %s118_s7 = sshll.u32 %s1004_s15, 4  ;;  %s119_s7 = int_to_ptr.hbm [resolvable:$true] %s118_s7 }
   0xe   :  { %s90_s26 = sshll.u32 %s751_s3, 4  ;;  %s1014_s0 = sld [smem:[#allocation21_spill]]  ;;  %s91_s26 = int_to_ptr.vmem [resolvable:$true] %s90_s26 }
   0xf   :  { %96 = dma.hbm_to_vmem [thread:$0]  %s89_s23, 1024, %s91_s26, [#allocation9], %s749_s24, %s749_s24, %s750_s25  }
  0x10   :  { %s752_s21 = smov [#allocation11]   ;;  %s753_s20 = smov [#allocation2]  }
  0x11   :  { %s120_s22 = sshll.u32 %s752_s21, 4  ;;  %s37_s15 = sshll.u32 %s753_s20, 4  ;;  %s121_s22 = int_to_ptr.vmem [resolvable:$true] %s120_s22  ;;  %s38_s15 = int_to_ptr.vmem [resolvable:$true] %s37_s15 }
  0x12   :  { %126 = dma.hbm_to_vmem [thread:$0]  %s119_s7, 1024, %s121_s22, [#allocation12], %s749_s24, %s749_s24, %s750_s25  }
  0x13   :  { %s73_s3 = sshll.u32 %s998_s9, 4  ;;  %s103_s27 = sshll.u32 %s1002_s13, 4  ;;  %s74_s3 = int_to_ptr.hbm [resolvable:$true] %s73_s3  ;;  %s104_s27 = int_to_ptr.hbm [resolvable:$true] %s103_s27 }
  0x14   :  { %s35_s30 = sshll.u32 %s1014_s0, 4  ;;  %s754_s28 = smov [#allocation7]   ;;  %s36_s30 = int_to_ptr.hbm [resolvable:$true] %s35_s30 }
  0x15   :  { %43 = dma.hbm_to_vmem [thread:$0]  %s36_s30, 512, %s38_s15, [#allocation3], %s749_s24, %s749_s24, %s750_s25  }
  0x16   :  { %s75_s11 = sshll.u32 %s754_s28, 4  ;;  %s755_s7 = smov [#allocation10]   ;;  %s76_s11 = int_to_ptr.vmem [resolvable:$true] %s75_s11 }
  0x17   :  { %81 = dma.hbm_to_vmem [thread:$0]  %s74_s3, 1024, %s76_s11, [#allocation6], %s749_s24, %s749_s24, %s750_s25  }
  0x18   :  { %s105_s9 = sshll.u32 %s755_s7, 4  ;;  %s133_s21 = sshll.u32 %s1006_s17, 4  ;;  %s106_s9 = int_to_ptr.vmem [resolvable:$true] %s105_s9  ;;  %s134_s21 = int_to_ptr.hbm [resolvable:$true] %s133_s21 }
  0x19   :  { %111 = dma.hbm_to_vmem [thread:$0]  %s104_s27, 1024, %s106_s9, [#allocation9], %s749_s24, %s749_s24, %s750_s25  }
  0x1a   :  { %s756_s13 = smov [#allocation13]  }
  0x1b   :  { %s135_s30 = sshll.u32 %s756_s13, 4  ;;  %s136_s30 = int_to_ptr.vmem [resolvable:$true] %s135_s30 }
  0x1c   :  { %141 = dma.hbm_to_vmem [thread:$0]  %s134_s21, 1024, %s136_s30, [#allocation12], %s749_s24, %s749_s24, %s750_s25  }
  0x1d   :  { %738 = dma.done.wait [#allocation3], 512  }
  0x1e   :  { %739 = vsyncadd [#allocation3], 4294966784 }
  0x1f   :  { %740 = dma.done.wait [#allocation6], 2048  }
  0x20   :  { %741 = vsyncadd [#allocation6], 4294965248 }
  0x21   :  { %742 = dma.done.wait [#allocation9], 2048  }
  0x22   :  { %743 = vsyncadd [#allocation9], 4294965248 }
  0x23   :  { %744 = dma.done.wait [#allocation12], 2048  }
  0x24   :  { %745 = vsyncadd [#allocation12], 4294965248  ;;  %v176_v0 = vld [vmem:[#allocation2 + $0x18] sm:$0xff]  ;;  %v175_v1 = vld [vmem:[#allocation2 + $0x10] sm:$0xff]  ;;  %s1015_s24 = sld [smem:[#allocation20_spill]]  ;;  %vm181_vm0 = vcmask 261120  }
  0x25   :  { %197 = vmatpush.msra.mxu0 %v176_v0  ;;  %v212_v2 = vld [vmem:[#allocation5 + $0x38] sm:$0xff]  ;;  %v174_v3 = vld [vmem:[#allocation2 + $0x8] sm:$0xff]  ;;  %v173_v4 = vld [vmem:[#allocation2] sm:$0xff]  ;;  %s1016_s15 = sld [smem:[#allocation22_spill]]  ;;  %vm235_vm1 = vcmask 523264   ;;  %s501_s2 = sshll.u32 %s1008_s19, 4  ;;  %s502_s2 = int_to_ptr.hbm [resolvable:$true] %s501_s2 }
  0x26   :  { %247 = vmatpush.msra.mxu1 %v212_v2  ;;  %v211_v5 = vld [vmem:[#allocation5 + $0x30] sm:$0xff]  ;;  %v210_v7 = vld [vmem:[#allocation5 + $0x28] sm:$0xff]  ;;  %v209_v8 = vld [vmem:[#allocation5 + $0x20] sm:$0xff]  ;;  %s1017_s26 = sld [smem:[#allocation23_spill]]  ;;  %vm492_vm2 = vcmask 130048  }
  0x27   :  { %198 = vmatpush.msra.mxu0 %v175_v1  ;;  %v208_v9 = vld [vmem:[#allocation5 + $0x18] sm:$0xff]  ;;  %v207_v10 = vld [vmem:[#allocation5 + $0x10] sm:$0xff]  ;;  %v206_v11 = vld [vmem:[#allocation5 + $0x8] sm:$0xff] }
  0x28   :  { %248 = vmatpush.msra.mxu1 %v211_v5  ;;  %v205_v12 = vld [vmem:[#allocation5] sm:$0xff]  ;;  %v221_v13 = vld [vmem:[#allocation7 + $0x38] sm:$0xff]  ;;  %v220_v15 = vld [vmem:[#allocation7 + $0x30] sm:$0xff] }
  0x29   :  { %199 = vmatpush.msra.mxu0 %v174_v3  ;;  %v230_v14 = vld [vmem:[#allocation8 + $0x38] sm:$0xff]  ;;  %274 = vmatpush.msra.mxu2 %v221_v13  ;;  %v229_v16 = vld [vmem:[#allocation8 + $0x30] sm:$0xff]  ;;  %v219_v17 = vld [vmem:[#allocation7 + $0x28] sm:$0xff] }
  0x2a   :  { %v172_v6 = vld [vmem:[%s1015_s24] sm:$0xff]  ;;  %249 = vmatpush.msra.mxu1 %v210_v7  ;;  %297 = vmatpush.msra.mxu3 %v230_v14  ;;  %v228_v18 = vld [vmem:[#allocation8 + $0x28] sm:$0xff]  ;;  %v217_v21 = vld [vmem:[#allocation7 + $0x18] sm:$0xff] }
  0x2b   :  { %200 = vmatpush.msra.mxu0 %v173_v4  ;;  %275 = vmatpush.msra.mxu2 %v220_v15  ;;  %v218_v19 = vld [vmem:[#allocation7 + $0x20] sm:$0xff]  ;;  %v226_v22 = vld [vmem:[#allocation8 + $0x18] sm:$0xff]  ;;  %v216_v26 = vld [vmem:[#allocation7 + $0x10] sm:$0xff] }
  0x2c   :  { %514 = vmatmul.msk.f32.vlgmr.msra.gmra.mxu0 %vm181_vm0, %v172_v6  ;;  %250 = vmatpush.msra.mxu1 %v209_v8  ;;  %v227_v20 = vld [vmem:[#allocation8 + $0x20] sm:$0xff]  ;;  %v225_v27 = vld [vmem:[#allocation8 + $0x10] sm:$0xff]  ;;  %v215_v28 = vld [vmem:[#allocation7 + $0x8] sm:$0xff] }
  0x2d   :  { %298 = vmatpush.msra.mxu3 %v229_v16  ;;  %276 = vmatpush.msra.mxu2 %v219_v17  ;;  %v533_v23 = vld [vmem:[%s1016_s15] ss:$0 sm:$0xff]  ;;  %v224_v29 = vld [vmem:[#allocation8 + $0x8] sm:$0xff]  ;;  %v321_v36 = vld [vmem:[%s1017_s26 + $0x38] sm:$0xff] }
  0x2e   :  { %251 = vmatpush.msra.mxu1 %v208_v9  ;;  %v214_v30 = vld [vmem:[#allocation7] sm:$0xff]  ;;  %337 = vmatpush.msrb.mxu0 %v321_v36  ;;  %v320_v37 = vld [vmem:[%s1017_s26 + $0x30] sm:$0xff]  ;;  %v319_v38 = vld [vmem:[%s1017_s26 + $0x28] sm:$0xff] }
  0x2f   :  { %299 = vmatpush.msra.mxu3 %v228_v18  ;;  %277 = vmatpush.msra.mxu2 %v218_v19  ;;  %v223_v31 = vld [vmem:[#allocation8] sm:$0xff]  ;;  %v317_v40 = vld [vmem:[%s1017_s26 + $0x18] sm:$0xff]  ;;  %v316_v41 = vld [vmem:[%s1017_s26 + $0x10] sm:$0xff] }
  0x30   :  { %252 = vmatpush.msra.mxu1 %v207_v10  ;;  %v534_v32 = vld [vmem:[%s997_s8] ss:$0 sm:$0xff]  ;;  %338 = vmatpush.msrb.mxu0 %v320_v37  ;;  %v315_v42 = vld [vmem:[%s1017_s26 + $0x8] sm:$0xff]  ;;  %v356_v44 = vld [vmem:[#allocation10 + $0x38] sm:$0xff] }
  0x31   :  { %300 = vmatpush.msra.mxu3 %v227_v20  ;;  %278 = vmatpush.msra.mxu2 %v217_v21  ;;  %v318_v39 = vld [vmem:[%s1017_s26 + $0x20] sm:$0xff]  ;;  %v355_v45 = vld [vmem:[#allocation10 + $0x30] sm:$0xff]  ;;  %v354_v46 = vld [vmem:[#allocation10 + $0x28] sm:$0xff] }
  0x32   :  { %253 = vmatpush.msra.mxu1 %v206_v11  ;;  %339 = vmatpush.msrb.mxu0 %v319_v38  ;;  %v314_v43 = vld [vmem:[%s1017_s26] sm:$0xff]  ;;  %v352_v48 = vld [vmem:[#allocation10 + $0x18] sm:$0xff]  ;;  %v351_v49 = vld [vmem:[#allocation10 + $0x10] sm:$0xff] }
  0x33   :  { %301 = vmatpush.msra.mxu3 %v226_v22  ;;  %279 = vmatpush.msra.mxu2 %v216_v26  ;;  %v353_v47 = vld [vmem:[#allocation10 + $0x20] sm:$0xff]  ;;  %v350_v61 = vld [vmem:[#allocation10 + $0x8] sm:$0xff]  ;;  %v365_v63 = vld [vmem:[#allocation11 + $0x38] sm:$0xff] }
  0x34   :  { %254 = vmatpush.msra.mxu1 %v205_v12  ;;  %340 = vmatpush.msrb.mxu0 %v318_v39  ;;  %v535_v50 = vld [vmem:[%s999_s10] ss:$0 sm:$0xff]  ;;  %v374_v0 = vld [vmem:[#allocation13 + $0x38] sm:$0xff]  ;;  %v364_v1 = vld [vmem:[#allocation11 + $0x30] sm:$0xff] }
  0x35   :  { %302 = vmatpush.msra.mxu3 %v225_v27  ;;  %280 = vmatpush.msra.mxu2 %v215_v28  ;;  %v536_v53 = vld [vmem:[%s1001_s12] ss:$0 sm:$0xff]  ;;  %v373_v2 = vld [vmem:[#allocation13 + $0x30] sm:$0xff]  ;;  %v363_v3 = vld [vmem:[#allocation11 + $0x28] sm:$0xff] }
  0x36   :  { %341 = vmatpush.msrb.mxu0 %v317_v40  ;;  %390 = vmatpush.msrb.mxu1 %v356_v44  ;;  %v349_v62 = vld [vmem:[#allocation10] sm:$0xff]  ;;  %v372_v4 = vld [vmem:[#allocation13 + $0x28] sm:$0xff]  ;;  %v361_v7 = vld [vmem:[#allocation11 + $0x18] sm:$0xff] }
  0x37   :  { %303 = vmatpush.msra.mxu3 %v224_v29  ;;  %281 = vmatpush.msra.mxu2 %v214_v30  ;;  %v362_v5 = vld [vmem:[#allocation11 + $0x20] sm:$0xff]  ;;  %v370_v8 = vld [vmem:[#allocation13 + $0x18] sm:$0xff]  ;;  %v360_v12 = vld [vmem:[#allocation11 + $0x10] sm:$0xff] }
  0x38   :  { %342 = vmatpush.msrb.mxu0 %v316_v41  ;;  %391 = vmatpush.msrb.mxu1 %v355_v45  ;;  %v371_v6 = vld [vmem:[#allocation13 + $0x20] sm:$0xff]  ;;  %v369_v13 = vld [vmem:[#allocation13 + $0x10] sm:$0xff]  ;;  %v359_v14 = vld [vmem:[#allocation11 + $0x8] sm:$0xff] }
  0x39   :  { %304 = vmatpush.msra.mxu3 %v223_v31  ;;  %417 = vmatpush.msrb.mxu2 %v365_v63  ;;  %v537_v9 = vld [vmem:[%s993_s4] ss:$0 sm:$0xff]  ;;  %v368_v15 = vld [vmem:[#allocation13 + $0x8] sm:$0xff]  ;;  %v464_v22 = vld [vmem:[%s994_s5 + $0x38] sm:$0xff] }
  0x3a   :  { %343 = vmatpush.msrb.mxu0 %v315_v42  ;;  %392 = vmatpush.msrb.mxu1 %v354_v46  ;;  %v358_v16 = vld [vmem:[#allocation11] sm:$0xff]  ;;  %v460_v26 = vld [vmem:[%s994_s5 + $0x18] sm:$0xff]  ;;  %v459_v27 = vld [vmem:[%s994_s5 + $0x10] sm:$0xff] }
  0x3b   :  { %440 = vmatpush.msrb.mxu3 %v374_v0  ;;  %418 = vmatpush.msrb.mxu2 %v364_v1  ;;  %v367_v17 = vld [vmem:[#allocation13] sm:$0xff]  ;;  %v458_v28 = vld [vmem:[%s994_s5 + $0x8] sm:$0xff] }
  0x3c   :  { %344 = vmatpush.msrb.mxu0 %v314_v43  ;;  %393 = vmatpush.msrb.mxu1 %v353_v47  ;;  %v538_v18 = vld [vmem:[%s1003_s14] ss:$0 sm:$0xff] }
  0x3d   :  { %441 = vmatpush.msrb.mxu3 %v373_v2  ;;  %419 = vmatpush.msrb.mxu2 %v363_v3  ;;  %v457_v29 = vld [vmem:[%s994_s5] sm:$0xff] }
  0x3e   :  { %394 = vmatpush.msrb.mxu1 %v352_v48  ;;  %480 = vmatpush.msra.mxu0 %v464_v22  ;;  %v539_v30 = vld [vmem:[%s1005_s16] ss:$0 sm:$0xff]  ;;  %s757_s16 = smov [#allocation14]  }
  0x3f   :  { %442 = vmatpush.msrb.mxu3 %v372_v4  ;;  %420 = vmatpush.msrb.mxu2 %v362_v5  ;;  %v541_v41 = vld [vmem:[%s995_s6] ss:$0 sm:$0xff]  ;;  %s499_s1 = sshll.u32 %s757_s16, 4  ;;  %s500_s1 = int_to_ptr.vmem [resolvable:$true] %s499_s1 }
  0x40   :  { %395 = vmatpush.msrb.mxu1 %v351_v49 }
  0x41   :  { %443 = vmatpush.msrb.mxu3 %v371_v6  ;;  %421 = vmatpush.msrb.mxu2 %v361_v7 }
  0x42   :  { %396 = vmatpush.msrb.mxu1 %v350_v61 }
  0x43   :  { %444 = vmatpush.msrb.mxu3 %v370_v8  ;;  %422 = vmatpush.msrb.mxu2 %v360_v12 }
  0x44   :  { %397 = vmatpush.msrb.mxu1 %v349_v62 }
  0x45   :  { %445 = vmatpush.msrb.mxu3 %v369_v13  ;;  %423 = vmatpush.msrb.mxu2 %v359_v14 }
  0x47   :  { %446 = vmatpush.msrb.mxu3 %v368_v15  ;;  %424 = vmatpush.msrb.mxu2 %v358_v16 }
  0x49   :  { %447 = vmatpush.msrb.mxu3 %v367_v17 }
  0xa9   :  { %v202_v24 = vpop.f32.mrf.mxu0 }
  0xaa   :  { %v203_v25 = vadd.f32 %v533_v23, %v202_v24  ;;  %v463_v23 = vld [vmem:[%s994_s5 + $0x30] sm:$0xff]  ;;  %v462_v24 = vld [vmem:[%s994_s5 + $0x28] sm:$0xff] }
  0xab   :  { %481 = vmatpush.msra.mxu0 %v463_v23 }
  0xac   :  { %515 = vmatmul.msk.f32.vlgmr.msra.gmra.mxu1 %vm235_vm1, %v203_v25 }
  0xad   :  { %482 = vmatpush.msra.mxu0 %v462_v24 }
 0x129   :  { %v256_v33 = vpop.f32.mrf.mxu1 }
 0x12a   :  { %v257_v34 = vadd.f32 %v534_v32, %v256_v33  ;;  %v540_v33 = vld [vmem:[%s1007_s18] ss:$0 sm:$0xff] }
 0x12c   :  { %v259_v35 = vmax.f32 %v257_v34, 0.0 }
 0x12e   :  { %516 = vmatmul.msk.f32.vlgmr.msra.gmra.mxu2 %vm235_vm1, %v259_v35  ;;  %517 = vmatmul.msk.f32.vlgmr.msra.gmra.mxu3 %vm235_vm1, %v259_v35 }
 0x1b1   :  { %v283_v51 = vpop.f32.mrf.mxu2  ;;  %v306_v55 = vpop.f32.mrf.mxu3 }
 0x1b2   :  { %v284_v52 = vadd.f32 %v535_v50, %v283_v51  ;;  %v307_v57 = vadd.f32 %v536_v53, %v306_v55 }
 0x1b4   :  { %542 = vtanh.f32 %v284_v52 }
 0x1ba   :  { %v543_v54 = vpop.eup %542 }
 0x1bb   :  { %v310_v56 = vadd.f32 1.0, %v543_v54 }
 0x1bd   :  { %v311_v58 = vmul.f32 %v310_v56, %v203_v25  ;;  %v461_v25 = vld [vmem:[%s994_s5 + $0x20] sm:$0xff] }
 0x1be   :  { %483 = vmatpush.msra.mxu0 %v461_v25 }
 0x1bf   :  { %v312_v59 = vadd.f32 %v311_v58, %v307_v57 }
 0x1c0   :  { %484 = vmatpush.msra.mxu0 %v460_v26 }
 0x1c1   :  { %v313_v60 = vmax.f32 %v312_v59, 0.0 }
 0x1c2   :  { %485 = vmatpush.msra.mxu0 %v459_v27 }
 0x1c3   :  { %518 = vmatmul.msk.f32.vlgmr.msrb.gmra.mxu0 %vm235_vm1, %v313_v60 }
 0x1c4   :  { %486 = vmatpush.msra.mxu0 %v458_v28 }
 0x1c6   :  { %487 = vmatpush.msra.mxu0 %v457_v29 }
 0x240   :  { %v346_v10 = vpop.f32.mrf.mxu0 }
 0x241   :  { %v347_v11 = vadd.f32 %v537_v9, %v346_v10 }
 0x243   :  { %519 = vmatmul.msk.f32.vlgmr.msrb.gmra.mxu1 %vm235_vm1, %v347_v11 }
 0x2c0   :  { %v399_v19 = vpop.f32.mrf.mxu1 }
 0x2c1   :  { %v400_v20 = vadd.f32 %v538_v18, %v399_v19 }
 0x2c3   :  { %v402_v21 = vmax.f32 %v400_v20, 0.0 }
 0x2c5   :  { %520 = vmatmul.msk.f32.vlgmr.msrb.gmra.mxu2 %vm235_vm1, %v402_v21  ;;  %521 = vmatmul.msk.f32.vlgmr.msrb.gmra.mxu3 %vm235_vm1, %v402_v21 }
 0x348   :  { %v426_v31 = vpop.f32.mrf.mxu2  ;;  %v449_v35 = vpop.f32.mrf.mxu3 }
 0x349   :  { %v427_v32 = vadd.f32 %v539_v30, %v426_v31  ;;  %v450_v37 = vadd.f32 %v540_v33, %v449_v35 }
 0x34b   :  { %544 = vtanh.f32 %v427_v32 }
 0x351   :  { %v545_v34 = vpop.eup %544 }
 0x352   :  { %v453_v36 = vadd.f32 1.0, %v545_v34 }
 0x354   :  { %v454_v38 = vmul.f32 %v453_v36, %v347_v11 }
 0x356   :  { %v455_v39 = vadd.f32 %v454_v38, %v450_v37 }
 0x358   :  { %v456_v40 = vmax.f32 %v455_v39, 0.0 }
 0x35a   :  { %522 = vmatmul.msk.f32.vlgmr.msra.gmra.mxu0 %vm235_vm1, %v456_v40 }
 0x3d7   :  { %v489_v42 = vpop.f32.mrf.mxu0 }
 0x3d8   :  { %v490_v43 = vadd.f32 %v541_v41, %v489_v42 }
 0x3da   :  { %493 = vst.msk [vmem:[#allocation14] sm:$0xff] %vm492_vm2, %v490_v43 }
 0x3db   :  { %504 = dma.vmem_to_hbm [thread:$0]  %s500_s1, 128, %s502_s2, [#allocation4]  }
 0x3dc   :  { %746 = dma.done.wait [#allocation4], 128  }
 0x3dd   :  { %747 = vsyncadd [#allocation4], 4294967168 }
 0x3de   :  { %509 = vsyncpa [#allocation3], 1 }
 0x3df   :  { %510 = vsyncpa [#allocation6], 1 }
 0x3e0   :  { %511 = vsyncpa [#allocation9], 1 }
 0x3e1   :  { %512 = vsyncpa [#allocation12], 1 }
 0x3e2   :  { %513 = vsyncpa [#allocation4], 1 }

</bundles_post_ra>
